<compile_context>
chip_gen: v7x
topology: tpu7x:2x2x1
jax: 0.10.0
libtpu: 0.0.40
codegen_flags: <defaults>
</compile_context>

<pallas_src>
import numpy as np
import jax
import jax.numpy as jnp
from jax.experimental import pallas as pl
from jax.experimental.pallas import tpu as pltpu


def _make_kernel(n_freq_pad, apply_sqrt):
    def _spec_kernel(frames_ref, w_ref, out_ref):
        # frames_ref: (tile_m, n_fft) bf16 ; w_ref: (n_fft, 2*Np) bf16 [cos | -sin]
        reim = jnp.dot(frames_ref[...], w_ref[...],
                       preferred_element_type=jnp.float32)   # (tile_m, 2*Np) f32
        re = reim[:, :n_freq_pad]
        im = reim[:, n_freq_pad:]
        p = re * re + im * im                                  # power spectrum
        if apply_sqrt:                                         # power == 1 fused
            p = jnp.sqrt(p)
        out_ref[...] = p
    return _spec_kernel


def _choose_tile_m(M, K, n_freq_pad, vmem_budget=28 * 1024 * 1024):
    """Largest tile_m (multiple of 8) whose working set fits the VMEM budget."""
    w_bytes = 2 * K * (2 * n_freq_pad) * 2          # bf16 basis (assume 2 buffers)
    for t in (512, 256, 128, 64, 32, 16, 8):
        frames_bytes = 2 * t * K * 2                # bf16 frames, double-buffered
        out_bytes = 2 * t * n_freq_pad * 4          # f32 output, double-buffered
        tmp_bytes = t * (2 * n_freq_pad) * 4        # matmul result intermediate
        if t <= max(M, 8) and w_bytes + frames_bytes + out_bytes + tmp_bytes <= vmem_budget:
            return t
    return 8


def _power_spec_pallas(frames, w, tile_m, n_freq_pad, apply_sqrt):
    M, K = frames.shape                              # M already padded to tile_m
    cost = pl.CostEstimate(
        flops=2 * M * K * (2 * n_freq_pad) + 3 * M * n_freq_pad,
        transcendentals=(M * n_freq_pad if apply_sqrt else 0),
        bytes_accessed=M * K * 2 + K * 2 * n_freq_pad * 2 + M * n_freq_pad * 4,
    )
    return pl.pallas_call(
        _make_kernel(n_freq_pad, apply_sqrt),
        out_shape=jax.ShapeDtypeStruct((M, n_freq_pad), jnp.float32),
        grid_spec=pltpu.PrefetchScalarGridSpec(
            num_scalar_prefetch=0,
            grid=(M // tile_m,),
            in_specs=[
                pl.BlockSpec((tile_m, K), lambda i: (i, 0)),
                pl.BlockSpec((K, 2 * n_freq_pad), lambda i: (0, 0)),
            ],
            out_specs=pl.BlockSpec((tile_m, n_freq_pad), lambda i: (i, 0)),
        ),
        compiler_params=pltpu.CompilerParams(
            dimension_semantics=("parallel",),
            vmem_limit_bytes=32 * 1024 * 1024,
        ),
        cost_estimate=cost,
    )(frames, w)


def _make_frames(audio, n_fft, hop, n_frames):
    """(B, Lp) -> (B, n_frames, n_fft) without a gather HLO when hop | n_fft."""
    B = audio.shape[0]
    if n_fft % hop == 0:
        r = n_fft // hop
        used = n_fft + (n_frames - 1) * hop          # multiple of hop
        chunks = audio[:, :used].reshape(B, used // hop, hop)
        parts = [chunks[:, j:j + n_frames] for j in range(r)]
        return jnp.concatenate(parts, axis=-1)
    # fallback for hop not dividing n_fft (still correct, uses gather)
    starts = jnp.arange(n_frames) * hop
    idx = starts[:, None] + jnp.arange(n_fft)[None, :]
    return audio[:, idx]


class Spec:
    """JAX/Pallas equivalent of diffsynth.spectral.Spec (rectangular window)."""

    def __init__(self, n_fft=128, hop_length=64, power=2, pad_end=True, center=True):
        if power not in (1, 2):
            raise ValueError("power must be 1 or 2")
        self.n_fft = n_fft
        self.hop_length = hop_length
        self.power = power
        self.pad_end = pad_end
        self.center = center
        self.n_freq = n_fft // 2 + 1
        # One-sided real-DFT basis (window=None -> ones), frequency axis padded
        # to a multiple of 128 (lane-dense); cos and -sin are fused side-by-side
        # into a single (n_fft, 2*n_freq_pad) matrix -> one wide MXU matmul.
        n = np.arange(n_fft, dtype=np.float64)[:, None]
        k = np.arange(self.n_freq, dtype=np.float64)[None, :]
        ang = 2.0 * np.pi * n * k / n_fft
        self.n_freq_pad = ((self.n_freq + 127) // 128) * 128
        w = np.zeros((n_fft, 2 * self.n_freq_pad), np.float32)
        w[:, : self.n_freq] = np.cos(ang)
        w[:, self.n_freq_pad: self.n_freq_pad + self.n_freq] = -np.sin(ang)
        self.w = jnp.asarray(w, dtype=jnp.bfloat16)   # bf16: MXU-native, half VMEM

    def __call__(self, audio):
        n_fft, hop = self.n_fft, self.hop_length
        B, L = audio.shape
        if self.pad_end:
            # Python `%` matches torch for L < n_fft too; reflect-center padding
            # (like torch.stft) still assumes L > n_fft // 2.
            remainder = (L - n_fft) % hop
            pad = 0 if remainder == 0 else hop - remainder
            if pad:
                audio = jnp.pad(audio, ((0, 0), (0, pad)))
        if self.center:
            audio = jnp.pad(audio, ((0, 0), (n_fft // 2, n_fft // 2)), mode="reflect")
        Lp = audio.shape[1]
        n_frames = 1 + (Lp - n_fft) // hop

        # bf16 before framing so the duplicated frame buffer is half-size.
        audio = audio.astype(jnp.bfloat16)
        frames = _make_frames(audio, n_fft, hop, n_frames)        # (B, T, n_fft)
        M = B * n_frames
        frames = frames.reshape(M, n_fft)

        tile_m = _choose_tile_m(M, n_fft, self.n_freq_pad)
        M_pad = ((M + tile_m - 1) // tile_m) * tile_m
        if M_pad != M:
            frames = jnp.pad(frames, ((0, M_pad - M), (0, 0)))

        power_pad = _power_spec_pallas(frames, self.w, tile_m, self.n_freq_pad,
                                       apply_sqrt=(self.power == 1))
        out = power_pad[:M, : self.n_freq].reshape(B, n_frames, self.n_freq)
        return jnp.transpose(out, (0, 2, 1))                      # (B, n_freq, T)


def _reference_spec(audio_np, n_fft, hop, pad_end=True, center=True):
    """Pure-numpy reference (same semantics as torch.stft power spectrum)."""
    B, L = audio_np.shape
    if pad_end:
        remainder = (L - n_fft) % hop
        pad = 0 if remainder == 0 else hop - remainder
        audio_np = np.pad(audio_np, ((0, 0), (0, pad)))
        L += pad
    if center:
        audio_np = np.pad(audio_np, ((0, 0), (n_fft // 2, n_fft // 2)), mode="reflect")
    Lp = audio_np.shape[1]
    T = 1 + (Lp - n_fft) // hop
    frames = np.stack([audio_np[:, t * hop: t * hop + n_fft] for t in range(T)], axis=1)
    X = np.fft.rfft(frames.astype(np.float64), axis=-1)
    return np.transpose(np.abs(X) ** 2, (0, 2, 1)).astype(np.float32)


if __name__ == "__main__":
    # Small config consistent with the module (scaled down from 2048/1024).
    n_fft, hop = 128, 64
    B, L = 2, 500  # L chosen so pad_end actually pads (remainder != 0)

    key = jax.random.PRNGKey(0)
    audio = jax.random.normal(key, (B, L), dtype=jnp.float32)

    spec_mod = Spec(n_fft=n_fft, hop_length=hop, power=2, pad_end=True, center=True)
    out = jax.block_until_ready(spec_mod(audio))

    ref = _reference_spec(np.asarray(audio), n_fft, hop)
    assert out.shape == ref.shape, (out.shape, ref.shape)
    # loose tolerance: bf16 MXU inputs (f32 accumulation) vs float64 FFT reference
    assert np.allclose(np.asarray(out), ref, rtol=5e-2, atol=5e-1), "mismatch vs reference"

    print("KERNEL_OK")
</pallas_src>

<mosaic_0001>
module attributes {stable_mosaic.version = 11 : i64} {
  func.func @_spec_kernel(%arg0: i32, %arg1: memref<16x128xbf16, #tpu.memory_space<vmem>>, %arg2: memref<128x256xbf16, #tpu.memory_space<vmem>>, %arg3: memref<16x128xf32, #tpu.memory_space<vmem>>) attributes {dimension_semantics = [#tpu.dimension_semantics<parallel>], iteration_bounds = array<i64: 2>, scalar_prefetch = 0 : i64, scratch_operands = 0 : i64, tpu.core_type = #tpu.core_type<tc>, window_params = [{transform_indices = @transform_0, window_bounds = array<i64: 16, 128>}, {pipeline_mode = #tpu.pipeline_mode<synchronous>, transform_indices = @transform_1, window_bounds = array<i64: 128, 256>}, {transform_indices = @transform_2, window_bounds = array<i64: 16, 128>}]} {
    %c0 = arith.constant 0 : index
    %c0_0 = arith.constant 0 : index
    %0 = vector.load %arg1[%c0, %c0_0] : memref<16x128xbf16, #tpu.memory_space<vmem>>, vector<16x128xbf16>
    %c0_1 = arith.constant 0 : index
    %c0_2 = arith.constant 0 : index
    %1 = vector.load %arg2[%c0_1, %c0_2] : memref<128x256xbf16, #tpu.memory_space<vmem>>, vector<128x256xbf16>
    %cst = arith.constant dense<0.000000e+00> : vector<16x256xf32>
    %2 = tpu.matmul %0, %1, %cst {dimension_numbers = #tpu.dot_dimension_numbers<[1], [0], [0], [1], [0, 0, 1, 1], [], []>} : vector<16x128xbf16>, vector<128x256xbf16>, vector<16x256xf32> -> vector<16x256xf32>
    %3 = vector.extract_strided_slice %2 {offsets = [0, 0], sizes = [16, 128], strides = [1, 1]} : vector<16x256xf32> to vector<16x128xf32>
    %4 = vector.extract_strided_slice %2 {offsets = [0, 128], sizes = [16, 128], strides = [1, 1]} : vector<16x256xf32> to vector<16x128xf32>
    %5 = arith.mulf %3, %3 : vector<16x128xf32>
    %6 = arith.mulf %4, %4 : vector<16x128xf32>
    %7 = arith.addf %5, %6 : vector<16x128xf32>
    %c0_3 = arith.constant 0 : index
    %c0_4 = arith.constant 0 : index
    %8 = vector.load %arg3[%c0_3, %c0_4] : memref<16x128xf32, #tpu.memory_space<vmem>>, vector<16x128xf32>
    tpu.vector_store %arg3[%c0_3, %c0_4], %7 {strides = array<i32>} : memref<16x128xf32, #tpu.memory_space<vmem>>, vector<16x128xf32>,
    return
  }
  func.func @transform_0(%arg0: i32) -> (i32, i32) {
    %c0_i32 = arith.constant 0 : i32
    %c0_i32_0 = arith.constant 0 : i32
    return %arg0, %c0_i32 : i32, i32
  }
  func.func @transform_1(%arg0: i32) -> (i32, i32) {
    %c0_i32 = arith.constant 0 : i32
    %c0_i32_0 = arith.constant 0 : i32
    %c0_i32_1 = arith.constant 0 : i32
    return %c0_i32, %c0_i32_0 : i32, i32
  }
  func.func @transform_2(%arg0: i32) -> (i32, i32) {
    %c0_i32 = arith.constant 0 : i32
    %c0_i32_0 = arith.constant 0 : i32
    return %arg0, %c0_i32 : i32, i32
  }
}

</mosaic_0001>

<bundles_post_ra>
// kernel: tpu_custom_call.1
= control target key start
LH: loop header
LB: loop body
LE: loop exit
PB: predicated region body
PF: predicated region fallthrough
CT: control target
= control target key end

     0   :  { %7 = vsyncpa [#allocation3], 0  ;;  %s916_s0 = inlined_call_operand.hbm [shape: bf16[32,128], index: 0, kind: input, shape index: {}]   ;;  %s917_s1 = inlined_call_operand.hbm [shape: bf16[128,256], index: 1, kind: input, shape index: {}]   ;;  %s918_s2 = inlined_call_operand.hbm [shape: f32[32,128], index: 2, kind: output, shape index: {}]  }
   0x1   :  { %9 = vsyncpa [#allocation3 + $0x1], 0 }
   0x2   :  { %10 = vsyncpa [#allocation6], 0 }
   0x3   :  { %11 = vsyncpa [#allocation4], 0 }
   0x4   :  { %13 = vsyncpa [#allocation4 + $0x1], 0  ;;  %s711_s9 = smov 0   ;;  %s713_s10 = smov 0  }
   0x5   :  { %s715_s11 = smov 0   ;;  %s717_s12 = smov 0  }
   0x6 LB: > { %s732_s13 = sadd.s32 4294967295, %s684_s12   ;;  %s432_s14 = sadd.s32 4294967294, %s684_s12   ;;  %s684_s12 = sphi %s717_s12, %s938_s12   ;;  %s680_s11 = sphi %s715_s11, %s937_s11   ;;  %s676_s10 = sphi %s713_s10, %s936_s10   ;;  %s672_s9 = sphi %s711_s9, %s935_s9  }
   0x7   : > { %p39_p0 = scmp.ne.s32.totalorder %s676_s10, %s672_s9  ;;  %p919_p1 = scmp.eq.s32.totalorder %s732_s13, 0 }
   0x8   : > { %p90_p3 = scmp.eq.s32.totalorder %s432_s14, 1  ;;  %p433_p5 = scmp.ge.s32.totalorder %s684_s12, 1 }
   0x9   : > { %p741_p4 = por %p919_p1, %p39_p0  ;;  %p97_p7 = scmp.lt.s32.totalorder %s684_s12, 3 }
   0xa   : > { %p746_p6 = por %p90_p3, %p39_p0  ;;  %s686_s18 = smov [#allocation5]  }
   0xb   : > { %s922_s15 = scalar_select %p741_p4, 1, 0 }
   0xc   : > { %s923_s16 = scalar_select %p746_p6, 1, 0 }
   0xd   : > { %p751_p8 = pnand %p433_p5, %p97_p7  ;;  %s109_s19 = sshll.u32 %s686_s18, 4  ;;  %s755_s19 = int_to_ptr.vmem [resolvable:$true] %s109_s19 }
   0xe   : > { %s767_s21 = sadd.s32 1, %s684_s12   ;;  %s26_s22 = sadd.s32 1, %s680_s11 }
   0xf   : > { %s924_s17 = scalar_select %p751_p8, 1, 0 }
  0x10   : > { %p475_p9 = pneg %p751_p8  ;;  %s23_s23 = ssub.s32 %s684_s12, %s767_s21 }
  0x11   : > { %s556_s26 = scalar_lea.hbm %s917_s1, 2048 }
  0x12   : > { %p762_p11 = pnand %p475_p9, %p919_p1  ;;  %p557_p12 = scmp.ne.s32.totalorder %s917_s1, %s556_s26 }
  0x13   : > { %p563_p5 = scmp.lt.u32.totalorder %s556_s26, %s917_s1 }
  0x14   : > { %p558_p13 = pneg %p762_p11 }
  0x16   : > { %p559_p0 = pnand %p558_p13, %p557_p12 }
  0x18   : > { %p560_p3 = pneg %p559_p0 }
  0x1a   : > { %p565_p7 = pnand %p563_p5, %p560_p3 }
  0x1c   : > { %568 = shalt.err (!%p565_p7)
}
  0x1d   : > { %s569_s3 = scalar_lea.vmem %s755_s19, 2048  ;;  %p577_p2 = scmp.lt.s32.totalorder %s755_s19, %s755_s19 }
  0x1e   : > { %p570_p9 = scmp.ne.s32.totalorder %s755_s19, %s569_s3  ;;  %p578_p6 = scmp.lt.s32.totalorder %s569_s3, %s569_s3 }
  0x20   : > { %p572_p10 = pnand %p570_p9, %p558_p13  ;;  %p579_p4 = por %p578_p6, %p577_p2 }
  0x22   : > { %p573_p1 = pneg %p572_p10 }
  0x24   : > { %p580_p8 = pnand %p579_p4, %p573_p1 }
  0x26   : > { %583 = shalt.err (!%p580_p8)
}
  0x27   : > { %s687_s4 = smov 128   ;;  %s688_s5 = smov 8  }
  0x28   : > { %478 = dma.hbm_to_vmem [thread:$0]  (!%p762_p11), %s917_s1, 2048, %s755_s19, [#allocation6], %s687_s4, %s687_s4, %s688_s5  }
  0x29   : > { %p24_p2 = scmp.eq.s32.totalorder %s23_s23, 0  ;;  %p33_p1 = scmp.ne.s32.totalorder %s680_s11, %s676_s10 }
  0x2a   : > { %p34_p4 = scmp.eq.s32.totalorder %s684_s12, 0  ;;  %p488_p6 = scmp.lt.s32.totalorder %s684_s12, 2 }
  0x2b   : > { %s798_s8 = scalar_select %p24_p2, %s680_s11, %s26_s22  }
  0x2c   : > { %p35_p8 = por %p34_p4, %p33_p1  ;;  %p926_p10 = scmp.eq.s32.totalorder %s732_s13, 1 }
  0x2d   : > { %s123_s18 = sand.u32 1, %s680_s11   ;;  %s465_s24 = sshll.u32 %s684_s12, 7 }
  0x2e   : > { %p802_p12 = por %p926_p10, %p33_p1  ;;  %s436_s25 = sshll.u32 %s123_s18, 3 }
  0x2f   : > { %s811_s27 = scalar_lea.hbm %s916_s0, %s465_s24  ;;  %s127_s19 = scalar_lea.vmem [#allocation2], %s436_s25 }
  0x30   : > { %s134_s22 = sshll.u32 %s127_s19, 4  ;;  %p813_p11 = pnand %p488_p6, %p35_p8  ;;  %s817_s22 = int_to_ptr.vmem [resolvable:$true] %s134_s22 }
  0x31   : > { %s819_s28 = scalar_lea.sflag [#allocation3], %s123_s18  ;;  %s584_s29 = scalar_lea.hbm %s811_s27, 128 }
  0x32   : > { %p585_p13 = scmp.ne.s32.totalorder %s811_s27, %s584_s29  ;;  %p586_p0 = pneg %p813_p11 }
  0x33   : > { %s589_s4 = scalar_lea.hbm %s916_s0, 256  ;;  %p590_p7 = scmp.lt.u32.totalorder %s811_s27, %s916_s0 }
  0x34   : > { %p587_p3 = pnand %p586_p0, %p585_p13  ;;  %p591_p9 = scmp.lt.u32.totalorder %s589_s4, %s584_s29 }
  0x35   : > { %p593_p1 = scmp.lt.u32.totalorder %s584_s29, %s811_s27 }
  0x36   : > { %p588_p5 = pneg %p587_p3  ;;  %p592_p2 = por %p591_p9, %p590_p7 }
  0x38   : > { %p594_p4 = por %p593_p1, %p592_p2 }
  0x3a   : > { %p595_p6 = pnand %p594_p4, %p588_p5 }
  0x3c   : > { %598 = shalt.err (!%p595_p6)
}
  0x3d   : > { %s599_s7 = scalar_lea.vmem %s817_s22, 128  ;;  %s689_s18 = smov [#allocation2]  }
  0x3e   : > { %p600_p8 = scmp.ne.s32.totalorder %s817_s22, %s599_s7  ;;  %s604_s24 = sshll.u32 %s689_s18, 4  ;;  %s605_s24 = int_to_ptr.vmem [resolvable:$false] %s604_s24 }
  0x3f   : > { %s606_s25 = scalar_lea.vmem %s605_s24, 256  ;;  %p607_p3 = scmp.lt.s32.totalorder %s817_s22, %s605_s24 }
  0x40   : > { %p602_p10 = pnand %p600_p8, %p586_p0  ;;  %p608_p7 = scmp.lt.s32.totalorder %s606_s25, %s599_s7 }
  0x42   : > { %p603_p13 = pneg %p602_p10  ;;  %p609_p9 = por %p608_p7, %p607_p3 }
  0x44   : > { %p610_p2 = pnand %p609_p9, %p603_p13 }
  0x46   : > { %613 = shalt.err (!%p610_p2)
}
  0x47   : > { %s690_s20 = smov 64   ;;  %s691_s26 = smov 4  }
  0x48   : > { %482 = dma.hbm_to_vmem [thread:$0]  (!%p813_p11), %s811_s27, 128, %s817_s22, %s819_s28, %s690_s20, %s690_s20, %s691_s26  }
  0x49   : > { %p929_p0 = scmp.ne.s32.totalorder %s924_s17, 0 }
  0x4a   : > { %s850_s19 = sand.u32 (!%p929_p0), 1, %s676_s10   ;;  %p930_p5 = scmp.ne.s32.totalorder (!%p929_p0), %s922_s15, 0 }
  0x4b   : > { %146 = sbr.rel (%p929_p0) target bundleno = 353 (0x161), region = 28  ;;  %s440_s29 = sshll.u32 (!%p929_p0), %s850_s19, 3 }
  0x4c   : > { %s149_s30 = scalar_lea.sflag (!%p929_p0), [#allocation3], %s850_s19  ;;  %s854_s3 = scalar_lea.vmem (!%p929_p0), [#allocation2], %s440_s29 }
  0x52   : > { %659 = dma.done.wait (%p930_p5), %s149_s30, 128  }
  0x53   : > { %661 = vsyncadd (%p930_p5), %s149_s30, 4294967168  ;;  %p931_p11 = scmp.eq.s32.totalorder %s732_s13, 0 }
  0x55   : > { %663 = dma.done.wait (%p931_p11), [#allocation6], 2048   ;;  %p932_p1 = pmov %p931_p11 }
  0x56   : > { %v692_v0 = vmov 0   ;;  %v531_v1 = vld [vmem:[#allocation5 + $0x4] ss:$8 sps:$4 sm:$0xff]   ;;  %v533_v2 = vld [vmem:[#allocation5] ss:$8 sps:$4 sm:$0xff]   ;;  %v555_v17 = vld [vmem:[%s854_s3] sm:$0xff]  }
  0x57   : > { %665 = vsyncadd (%p932_p1), [#allocation6], 4294965248  ;;  %316 = vmatprep.mubr.bf16.mxu0 %v692_v0  ;;  %284 = vmatprep.subr.bf16.mxu0 %v531_v1  ;;  %v534_v3 = vld [vmem:[#allocation5 + $0x14] ss:$8 sps:$4 sm:$0xff]   ;;  %v536_v4 = vld [vmem:[#allocation5 + $0x10] ss:$8 sps:$4 sm:$0xff]  }
  0x58   : > { %285 = vmatpush1.bf16.msra.mxu0 %v533_v2  ;;  %v537_v5 = vld [vmem:[#allocation5 + $0x24] ss:$8 sps:$4 sm:$0xff]   ;;  %v539_v6 = vld [vmem:[#allocation5 + $0x20] ss:$8 sps:$4 sm:$0xff]   ;;  %v540_v7 = vld [vmem:[#allocation5 + $0x34] ss:$8 sps:$4 sm:$0xff]  }
  0x59   : > { %286 = vmatprep.subr.bf16.mxu0 %v534_v3  ;;  %v542_v8 = vld [vmem:[#allocation5 + $0x30] ss:$8 sps:$4 sm:$0xff]   ;;  %v543_v9 = vld [vmem:[#allocation5 + $0x44] ss:$8 sps:$4 sm:$0xff]   ;;  %v545_v10 = vld [vmem:[#allocation5 + $0x40] ss:$8 sps:$4 sm:$0xff]  }
  0x5a   : > { %v546_v11 = vld [vmem:[#allocation5 + $0x54] ss:$8 sps:$4 sm:$0xff]   ;;  %v548_v12 = vld [vmem:[#allocation5 + $0x50] ss:$8 sps:$4 sm:$0xff]   ;;  %v549_v13 = vld [vmem:[#allocation5 + $0x64] ss:$8 sps:$4 sm:$0xff]  }
  0x5b   : > { %v551_v14 = vld [vmem:[#allocation5 + $0x60] ss:$8 sps:$4 sm:$0xff]   ;;  %v552_v15 = vld [vmem:[#allocation5 + $0x74] ss:$8 sps:$4 sm:$0xff]   ;;  %v554_v16 = vld [vmem:[#allocation5 + $0x70] ss:$8 sps:$4 sm:$0xff]  }
  0x5c   : > { %287 = vmatpush1.bf16.msra.mxu0 %v536_v4  ;;  %s442_s15 = sshll.u32 %s850_s19, 4  ;;  %s466_s22 = sshll.u32 %s732_s13, 8 }
  0x5d   : > { %288 = vmatprep.subr.bf16.mxu0 %v537_v5  ;;  %s176_s17 = scalar_lea.vmem [#allocation7], %s442_s15  ;;  %s872_s4 = scalar_lea.hbm %s918_s2, %s466_s22 }
  0x5e   : > { %s349_s27 = sshll.u32 %s176_s17, 4  ;;  %s336_s5 = scalar_lea.sflag [#allocation4], %s850_s19  ;;  %s867_s27 = int_to_ptr.vmem [resolvable:$true] %s349_s27 }
  0x5f   : > { %s614_s6 = scalar_lea.vmem %s867_s27, 256  ;;  %s693_s13 = smov [#allocation7]  }
  0x60   : > { %289 = vmatpush1.bf16.msra.mxu0 %v539_v6  ;;  %p615_p4 = scmp.ne.s32.totalorder %s867_s27, %s614_s6  ;;  %s618_s7 = sshll.u32 %s693_s13, 4  ;;  %s619_s7 = int_to_ptr.vmem [resolvable:$false] %s618_s7 }
  0x61   : > { %290 = vmatprep.subr.bf16.mxu0 %v540_v7  ;;  %s620_s18 = scalar_lea.vmem %s619_s7, 512  ;;  %p621_p10 = scmp.lt.s32.totalorder %s867_s27, %s619_s7 }
  0x62   : > { %p616_p6 = pnand %p615_p4, %p802_p12  ;;  %p622_p13 = scmp.lt.s32.totalorder %s620_s18, %s614_s6 }
  0x64   : > { %291 = vmatpush1.bf16.msra.mxu0 %v542_v8  ;;  %p617_p8 = pneg %p616_p6  ;;  %p623_p3 = por %p622_p13, %p621_p10 }
  0x65   : > { %292 = vmatprep.subr.bf16.mxu0 %v543_v9 }
  0x66   : > { %p624_p7 = pnand %p623_p3, %p617_p8 }
  0x68   : > { %293 = vmatpush1.bf16.msra.mxu0 %v545_v10 }
  0x69   : > { %294 = vmatprep.subr.bf16.mxu0 %v546_v11 }
  0x6c   : > { %295 = vmatpush1.bf16.msra.mxu0 %v548_v12 }
  0x6d   : > { %296 = vmatprep.subr.bf16.mxu0 %v549_v13 }
  0x70   : > { %297 = vmatpush1.bf16.msra.mxu0 %v551_v14 }
  0x71   : > { %298 = vmatprep.subr.bf16.mxu0 %v552_v15 }
  0x74   : > { %299 = vmatpush1.bf16.msra.mxu0 %v554_v16 }
  0x77   : > { %317 = vmatmul.mubr.bf16.vlgmr.msra.gmra.mrb[0].mxu0 %v555_v17 }
 0x14a   : > { %v318_v18 = vpop.f32.mrb[0].mxu0 }
 0x14b   : > { %v327_v19 = vmul.f32 %v318_v18, %v318_v18  ;;  %v320_v20 = vpop.f32.mrb[1].mxu0 }
 0x14c   : > { %v329_v21 = vmul.f32 %v320_v20, %v320_v20  ;;  %v322_v22 = vpop.f32.mrb[2].mxu0 }
 0x14d   : > { %v328_v23 = vmul.f32 %v322_v22, %v322_v22  ;;  %v324_v24 = vpop.f32.mrb[3].mxu0 }
 0x14e   : > { %v331_v25 = vadd.f32 %v329_v21, %v327_v19  ;;  %v330_v26 = vmul.f32 %v324_v24, %v324_v24 }
 0x150   : > { %333 = vst [vmem:[%s176_s17] sm:$0xff] %v331_v25  ;;  %v332_v27 = vadd.f32 %v330_v26, %v328_v23 }
 0x152   : > { %334 = vst [vmem:[%s176_s17 + $0x8] sm:$0xff] %v332_v27 }
 0x153   : > { %627 = shalt.err (!%p624_p7)
}
 0x154   : > { %s628_s24 = scalar_lea.hbm %s872_s4, 256  ;;  %s632_s26 = scalar_lea.hbm %s918_s2, 512 }
 0x155   : > { %p629_p9 = scmp.ne.s32.totalorder %s872_s4, %s628_s24  ;;  %p633_p5 = scmp.lt.u32.totalorder %s872_s4, %s918_s2 }
 0x156   : > { %p634_p11 = scmp.lt.u32.totalorder %s632_s26, %s628_s24  ;;  %p636_p4 = scmp.lt.u32.totalorder %s628_s24, %s872_s4 }
 0x157   : > { %p630_p2 = pnand %p629_p9, %p802_p12 }
 0x158   : > { %p635_p1 = por %p634_p11, %p633_p5 }
 0x159   : > { %p631_p0 = pneg %p630_p2 }
 0x15a   : > { %p637_p6 = por %p636_p4, %p635_p1 }
 0x15c   : > { %p638_p8 = pnand %p637_p6, %p631_p0 }
 0x15e   : > { %641 = shalt.err (!%p638_p8)
}
 0x15f   : > { %s694_s3 = smov 128   ;;  %s695_s15 = smov 8  }
 0x160   : > { %473 = dma.vmem_to_hbm [thread:$0]  (%p802_p12), %s867_s27, 256, %s872_s4, %s336_s5, %s694_s3, %s694_s3, %s695_s15  }
 0x161 PF: > { %s364_s17 = sand.u32 1, %s672_s9   ;;  %p933_p10 = scmp.ne.s32.totalorder %s923_s16, 0 }
 0x162   : > { %p934_p13 = scmp.ge.s32.totalorder %s684_s12, 2  ;;  %s365_s22 = scalar_lea.sflag [#allocation4], %s364_s17 }
 0x164   : > { %p484_p3 = pnand %p934_p13, %p933_p10 }
 0x166   : > { %667 = dma.done.wait (!%p484_p3), %s365_s22, 256  }
 0x167   : > { %669 = vsyncadd (!%p484_p3), %s365_s22, 4294967040  ;;  %p16_p7 = scmp.ge.s32.totalorder %s767_s21, 4   ;;  %s935_s9 = smov %s676_s10 }
 0x168   : > { %s936_s10 = smov %s680_s11  ;;  %s937_s11 = smov %s798_s8 }
 0x169   : > { %s938_s12 = smov %s767_s21  ;;  %18 = sbr.rel (!%p16_p7) target bundleno = 6 (0x6), region = 77 }
 0x170   :  { %370 = vsyncpa [#allocation3], 1 }
 0x171   :  { %372 = vsyncpa [#allocation3 + $0x1], 1 }
 0x172   :  { %373 = vsyncpa [#allocation6], 1 }
 0x173   :  { %374 = vsyncpa [#allocation4], 1 }
 0x174   :  { %376 = vsyncpa [#allocation4 + $0x1], 1 }

</bundles_post_ra>
